<compile_context>
chip_gen: v7x
topology: tpu7x:2x2x1
jax: 0.10.0
libtpu: 0.0.40
codegen_flags: <defaults>
</compile_context>

<pallas_src>
import math

import jax
import jax.numpy as jnp
from jax.experimental import pallas as pl
from jax.experimental.pallas import tpu as pltpu


def match_lr_kernel(sub_ref, rev_ref, mats_ref, vecs_ref, out_ref):
    sub = sub_ref[...]                       # (Tb, D)   f32
    rev = rev_ref[...]                       # (Tb, N, D)
    m = mats_ref[0]                          # (D, D) = (wq @ wk.T) / sqrt(A)
    w2 = mats_ref[1]                         # (D, D)
    vecs = vecs_ref[...]                     # (6, D)
    v      = vecs[0:1, :]                    # (bq @ wk.T) / sqrt(A)
    b2     = vecs[1:2, :]
    w_add  = vecs[2:3, :]
    w_diff = vecs[3:4, :]
    w_co   = vecs[4:5, :]                    # (wc @ wo).T
    b_co   = vecs[5:6, 0:1]                  # scalar (bc @ wo + bo)

    # --- Attention_Module (folded): e[b,n] = (sub@M + v) · rev[b,n] ---
    # MXU matmul (f32 accumulate) for the D×D contraction.
    coef = jnp.dot(sub, m, preferred_element_type=jnp.float32) + v       # (Tb, D)
    # per-n contractions stay on the VPU/XLU (N = 8 is tiny).
    e = jnp.sum(coef[:, None, :] * rev, axis=-1)                         # (Tb, N)
    e = e - jnp.max(e, axis=-1, keepdims=True)
    p = jnp.exp(e)                                                       # unnormalized
    l = jnp.sum(p, axis=-1, keepdims=True)                               # (Tb, 1)

    # weighted reviewer embedding from unnormalized weights, normalized once.
    wr = jnp.sum(p[:, :, None] * rev, axis=1)                            # (Tb, D)
    wr = wr * pl.reciprocal(l, approx=False)

    # --- Match_LR head ---
    r = jnp.dot(wr, w2, preferred_element_type=jnp.float32) + b2         # fc2(wr), MXU
    h = jnp.tanh(w_add * (sub + r)) + jnp.tanh(w_diff * (sub - r))       # (Tb, D)
    # combined -> output folded into a single (D,) projection:
    logit = jnp.sum(h * w_co, axis=-1, keepdims=True) + b_co             # (Tb, 1)
    out_ref[...] = 3.0 * jax.nn.sigmoid(logit)


@jax.jit
def match_lr_forward(submitter_emb, reviewer_emb, params):
    B, D = submitter_emb.shape
    _, N, _ = reviewer_emb.shape
    A = params["wq"].shape[1]
    inv_sqrt_a = 1.0 / math.sqrt(A)

    # ---- host-side algebraic folds (outside the kernel) ----
    m = (params["wq"] @ params["wk"].T) * inv_sqrt_a     # (D, D), un-transposed for MXU
    v = (params["bq"] @ params["wk"].T) * inv_sqrt_a     # (1, D)
    w_co = (params["wc"] @ params["wo"]).T               # (1, D)  combined∘output weight
    b_co = params["bc"] @ params["wo"] + params["bo"]    # (1, 1)

    # ---- pack 12 parameter tensors into 2 contiguous buffers ----
    mats = jnp.stack([m, params["w2"]])                  # (2, D, D)
    vecs = jnp.concatenate(
        [v, params["b2"], params["w_add"], params["w_diff"], w_co,
         jnp.broadcast_to(b_co, (1, D))], axis=0)        # (6, D)

    # ---- batch-grid tiling (no host-side padding of reviewer_emb) ----
    # Tb=512: rev block = 2 MiB in VMEM (D=25 pads to 128 lanes), x2 buffers
    # stays well inside every generation's default scoped VMEM. For small B a
    # single exact-size block is used.
    Tb = B if B <= 512 else 512
    grid = (pl.cdiv(B, Tb),)

    flops = 4 * B * D * D + 4 * B * N * D + 10 * B * D + 6 * B * N + 4 * B
    transcendentals = 2 * B * D + B * N + 2 * B
    bytes_accessed = 4 * (B * D + B * N * D + 2 * D * D + 6 * D + B)

    out = pl.pallas_call(
        match_lr_kernel,
        out_shape=jax.ShapeDtypeStruct((B, 1), jnp.float32),
        grid=grid,
        in_specs=[
            pl.BlockSpec((Tb, D), lambda i: (i, 0)),          # sub: walks batch
            pl.BlockSpec((Tb, N, D), lambda i: (i, 0, 0)),    # rev: walks batch
            pl.BlockSpec((2, D, D), lambda i: (0, 0, 0)),     # mats: resident
            pl.BlockSpec((6, D), lambda i: (0, 0)),           # vecs: resident
        ],
        out_specs=pl.BlockSpec((Tb, 1), lambda i: (i, 0)),
        compiler_params=pltpu.CompilerParams(
            dimension_semantics=("parallel",)),
        cost_estimate=pl.CostEstimate(flops=int(flops),
                                      transcendentals=int(transcendentals),
                                      bytes_accessed=int(bytes_accessed)),
    )(submitter_emb, reviewer_emb, mats, vecs)
    return out[:, 0]                                      # matches op.view(-1)


def init_params(key, D=25, A=20, hidden=128):
    """Deterministic synthetic init mirroring the module's parameter shapes."""
    ks = jax.random.split(key, 11)
    u = lambda k, shape, s: jax.random.uniform(k, shape, jnp.float32, -s, s)
    sd, sh = 1.0 / math.sqrt(D), 1.0 / math.sqrt(hidden)
    return {
        # Attention_Module(25, A): W_Q, W_K (W_V unused in forward)
        "wq": u(ks[0], (D, A), sd), "bq": u(ks[1], (1, A), sd),
        "wk": u(ks[2], (D, A), sd), "bk": u(ks[3], (1, A), sd),
        # fc2: Linear(D, D), bias zeroed in init_weights()
        "w2": u(ks[4], (D, D), sd), "b2": jnp.zeros((1, D), jnp.float32),
        # weights_add / weights_diff ~ U(-4, 4)  (weights_multi unused in forward)
        "w_add": u(ks[5], (1, D), 4.0), "w_diff": u(ks[6], (1, D), 4.0),
        # combined: Linear(D, 128)
        "wc": u(ks[7], (D, hidden), sd), "bc": u(ks[8], (1, hidden), sd),
        # output: Linear(128, 1)
        "wo": u(ks[9], (hidden, 1), sh), "bo": u(ks[10], (1, 1), sh),
    }


def match_lr_reference(sub, rev, p):
    """Pure-JAX reference of the (un-folded) PyTorch forward, for validation."""
    A = p["wq"].shape[1]
    q = sub @ p["wq"] + p["bq"]
    k = jnp.einsum("bnd,da->bna", rev, p["wk"]) + p["bk"]
    e = jnp.einsum("ba,bna->bn", q, k) / math.sqrt(A)
    attn = jax.nn.softmax(e, axis=-1)
    wr = jnp.einsum("bn,bnd->bd", attn, rev)
    r = wr @ p["w2"] + p["b2"]
    h = jnp.tanh(p["w_add"] * (sub + r)) + jnp.tanh(p["w_diff"] * (sub - r))
    combo = h @ p["wc"] + p["bc"]
    return (3.0 * jax.nn.sigmoid(combo @ p["wo"] + p["bo"])).reshape(-1)


if __name__ == "__main__":
    key = jax.random.PRNGKey(0)
    k_sub, k_rev, k_par = jax.random.split(key, 3)

    # num_topics is hard-wired to 25 in Match_LR, so paper_representation_dim = 25.
    B, N, D, A = 2, 8, 25, 20
    submitter_emb = jax.random.normal(k_sub, (B, D), jnp.float32)
    reviewer_emb = jax.random.normal(k_rev, (B, N, D), jnp.float32)
    params = init_params(k_par, D=D, A=A)

    out = match_lr_forward(submitter_emb, reviewer_emb, params)
    jax.block_until_ready(out)

    ref = match_lr_reference(submitter_emb, reviewer_emb, params)
    assert out.shape == (B,)
    # slightly looser atol than 1e-5: the host-side algebraic folds (wc@wo,
    # wq@wk.T/sqrt(A)) change fp32 association order relative to the reference.
    assert jnp.allclose(out, ref, atol=5e-5, rtol=1e-5), (out, ref)
    print("KERNEL_OK")
</pallas_src>

<mosaic_0001>
module attributes {stable_mosaic.version = 11 : i64} {
  func.func @match_lr_kernel(%arg0: i32, %arg1: memref<2x25xf32, #tpu.memory_space<vmem>>, %arg2: memref<2x8x25xf32, #tpu.memory_space<vmem>>, %arg3: memref<2x25x25xf32, #tpu.memory_space<vmem>>, %arg4: memref<6x25xf32, #tpu.memory_space<vmem>>, %arg5: memref<2x1xf32, #tpu.memory_space<vmem>>) attributes {dimension_semantics = [#tpu.dimension_semantics<parallel>], iteration_bounds = array<i64: 1>, scalar_prefetch = 0 : i64, scratch_operands = 0 : i64, tpu.core_type = #tpu.core_type<tc>, window_params = [{transform_indices = @transform_0, window_bounds = array<i64: 2, 25>}, {transform_indices = @transform_1, window_bounds = array<i64: 2, 8, 25>}, {pipeline_mode = #tpu.pipeline_mode<synchronous>, transform_indices = @transform_2, window_bounds = array<i64: 2, 25, 25>}, {pipeline_mode = #tpu.pipeline_mode<synchronous>, transform_indices = @transform_3, window_bounds = array<i64: 6, 25>}, {transform_indices = @transform_4, window_bounds = array<i64: 2, 1>}]} {
    %c0 = arith.constant 0 : index
    %c0_0 = arith.constant 0 : index
    %0 = vector.load %arg1[%c0, %c0_0] : memref<2x25xf32, #tpu.memory_space<vmem>>, vector<2x25xf32>
    %c0_1 = arith.constant 0 : index
    %c0_2 = arith.constant 0 : index
    %c0_3 = arith.constant 0 : index
    %1 = vector.load %arg2[%c0_1, %c0_2, %c0_3] : memref<2x8x25xf32, #tpu.memory_space<vmem>>, vector<2x8x25xf32>
    %c0_4 = arith.constant 0 : index
    %c0_5 = arith.constant 0 : index
    %c0_6 = arith.constant 0 : index
    %2 = vector.load %arg3[%c0_4, %c0_5, %c0_6] : memref<2x25x25xf32, #tpu.memory_space<vmem>>, vector<1x25x25xf32>
    %3 = vector.shape_cast %2 : vector<1x25x25xf32> to vector<25x25xf32>
    %c1 = arith.constant 1 : index
    %c0_7 = arith.constant 0 : index
    %c0_8 = arith.constant 0 : index
    %4 = vector.load %arg3[%c1, %c0_7, %c0_8] : memref<2x25x25xf32, #tpu.memory_space<vmem>>, vector<1x25x25xf32>
    %5 = vector.shape_cast %4 : vector<1x25x25xf32> to vector<25x25xf32>
    %c0_9 = arith.constant 0 : index
    %c0_10 = arith.constant 0 : index
    %6 = vector.load %arg4[%c0_9, %c0_10] : memref<6x25xf32, #tpu.memory_space<vmem>>, vector<6x25xf32>
    %7 = vector.extract_strided_slice %6 {offsets = [0, 0], sizes = [1, 25], strides = [1, 1]} : vector<6x25xf32> to vector<1x25xf32>
    %8 = vector.extract_strided_slice %6 {offsets = [1, 0], sizes = [1, 25], strides = [1, 1]} : vector<6x25xf32> to vector<1x25xf32>
    %9 = vector.extract_strided_slice %6 {offsets = [2, 0], sizes = [1, 25], strides = [1, 1]} : vector<6x25xf32> to vector<1x25xf32>
    %10 = vector.extract_strided_slice %6 {offsets = [3, 0], sizes = [1, 25], strides = [1, 1]} : vector<6x25xf32> to vector<1x25xf32>
    %11 = vector.extract_strided_slice %6 {offsets = [4, 0], sizes = [1, 25], strides = [1, 1]} : vector<6x25xf32> to vector<1x25xf32>
    %12 = vector.extract_strided_slice %6 {offsets = [5, 0], sizes = [1, 1], strides = [1, 1]} : vector<6x25xf32> to vector<1x1xf32>
    %cst = arith.constant dense<0.000000e+00> : vector<2x25xf32>
    %13 = tpu.matmul %0, %3, %cst {dimension_numbers = #tpu.dot_dimension_numbers<[1], [0], [0], [1], [0, 0, 1, 1], [], []>} : vector<2x25xf32>, vector<25x25xf32>, vector<2x25xf32> -> vector<2x25xf32>
    %14 = vector.broadcast %7 : vector<1x25xf32> to vector<2x25xf32>
    %15 = arith.addf %13, %14 : vector<2x25xf32>
    %16 = vector.shape_cast %15 : vector<2x25xf32> to vector<2x1x25xf32>
    %17 = vector.broadcast %16 : vector<2x1x25xf32> to vector<2x8x25xf32>
    %18 = arith.mulf %17, %1 : vector<2x8x25xf32>
    %cst_11 = arith.constant dense<0.000000e+00> : vector<2x8xf32>
    %19 = vector.multi_reduction <add>, %18, %cst_11 [2] : vector<2x8x25xf32> to vector<2x8xf32>
    %cst_12 = arith.constant dense<0xFF800000> : vector<2xf32>
    %20 = vector.multi_reduction <maximumf>, %19, %cst_12 [1] : vector<2x8xf32> to vector<2xf32>
    %21 = vector.shape_cast %20 : vector<2xf32> to vector<2x1xf32>
    %22 = vector.broadcast %21 : vector<2x1xf32> to vector<2x8xf32>
    %23 = arith.subf %19, %22 : vector<2x8xf32>
    %24 = math.exp %23 : vector<2x8xf32>
    %cst_13 = arith.constant dense<0.000000e+00> : vector<2xf32>
    %25 = vector.multi_reduction <add>, %24, %cst_13 [1] : vector<2x8xf32> to vector<2xf32>
    %26 = vector.shape_cast %25 : vector<2xf32> to vector<2x1xf32>
    %27 = vector.shape_cast %24 : vector<2x8xf32> to vector<2x8x1xf32>
    %28 = vector.broadcast %27 : vector<2x8x1xf32> to vector<2x8x25xf32>
    %29 = arith.mulf %28, %1 : vector<2x8x25xf32>
    %cst_14 = arith.constant dense<0.000000e+00> : vector<2x25xf32>
    %30 = vector.multi_reduction <add>, %29, %cst_14 [1] : vector<2x8x25xf32> to vector<2x25xf32>
    %31 = tpu.reciprocal %26 : vector<2x1xf32> -> vector<2x1xf32>
    %32 = vector.broadcast %31 : vector<2x1xf32> to vector<2x25xf32>
    %33 = arith.mulf %30, %32 : vector<2x25xf32>
    %cst_15 = arith.constant dense<0.000000e+00> : vector<2x25xf32>
    %34 = tpu.matmul %33, %5, %cst_15 {dimension_numbers = #tpu.dot_dimension_numbers<[1], [0], [0], [1], [0, 0, 1, 1], [], []>} : vector<2x25xf32>, vector<25x25xf32>, vector<2x25xf32> -> vector<2x25xf32>
    %35 = vector.broadcast %8 : vector<1x25xf32> to vector<2x25xf32>
    %36 = arith.addf %34, %35 : vector<2x25xf32>
    %37 = arith.addf %0, %36 : vector<2x25xf32>
    %38 = vector.broadcast %9 : vector<1x25xf32> to vector<2x25xf32>
    %39 = arith.mulf %38, %37 : vector<2x25xf32>
    %40 = math.tanh %39 : vector<2x25xf32>
    %41 = arith.subf %0, %36 : vector<2x25xf32>
    %42 = vector.broadcast %10 : vector<1x25xf32> to vector<2x25xf32>
    %43 = arith.mulf %42, %41 : vector<2x25xf32>
    %44 = math.tanh %43 : vector<2x25xf32>
    %45 = arith.addf %40, %44 : vector<2x25xf32>
    %46 = vector.broadcast %11 : vector<1x25xf32> to vector<2x25xf32>
    %47 = arith.mulf %45, %46 : vector<2x25xf32>
    %cst_16 = arith.constant dense<0.000000e+00> : vector<2xf32>
    %48 = vector.multi_reduction <add>, %47, %cst_16 [1] : vector<2x25xf32> to vector<2xf32>
    %49 = vector.shape_cast %48 : vector<2xf32> to vector<2x1xf32>
    %50 = vector.broadcast %12 : vector<1x1xf32> to vector<2x1xf32>
    %51 = arith.addf %49, %50 : vector<2x1xf32>
    %52 = arith.negf %51 : vector<2x1xf32>
    %53 = math.exp %52 : vector<2x1xf32>
    %cst_17 = arith.constant 1.000000e+00 : f32
    %54 = vector.broadcast %cst_17 : f32 to vector<2x1xf32>
    %55 = arith.addf %54, %53 : vector<2x1xf32>
    %56 = arith.divf %54, %55 : vector<2x1xf32>
    %cst_18 = arith.constant 3.000000e+00 : f32
    %57 = vector.broadcast %cst_18 : f32 to vector<2x1xf32>
    %58 = arith.mulf %57, %56 : vector<2x1xf32>
    %c0_19 = arith.constant 0 : index
    %c0_20 = arith.constant 0 : index
    %59 = vector.load %arg5[%c0_19, %c0_20] : memref<2x1xf32, #tpu.memory_space<vmem>>, vector<2x1xf32>
    tpu.vector_store %arg5[%c0_19, %c0_20], %58 {strides = array<i32>} : memref<2x1xf32, #tpu.memory_space<vmem>>, vector<2x1xf32>,
    return
  }
  func.func @transform_0(%arg0: i32) -> (i32, i32) {
    %c0_i32 = arith.constant 0 : i32
    %c0_i32_0 = arith.constant 0 : i32
    return %arg0, %c0_i32 : i32, i32
  }
  func.func @transform_1(%arg0: i32) -> (i32, i32, i32) {
    %c0_i32 = arith.constant 0 : i32
    %c0_i32_0 = arith.constant 0 : i32
    %c0_i32_1 = arith.constant 0 : i32
    return %arg0, %c0_i32, %c0_i32_0 : i32, i32, i32
  }
  func.func @transform_2(%arg0: i32) -> (i32, i32, i32) {
    %c0_i32 = arith.constant 0 : i32
    %c0_i32_0 = arith.constant 0 : i32
    %c0_i32_1 = arith.constant 0 : i32
    %c0_i32_2 = arith.constant 0 : i32
    return %c0_i32, %c0_i32_0, %c0_i32_1 : i32, i32, i32
  }
  func.func @transform_3(%arg0: i32) -> (i32, i32) {
    %c0_i32 = arith.constant 0 : i32
    %c0_i32_0 = arith.constant 0 : i32
    %c0_i32_1 = arith.constant 0 : i32
    return %c0_i32, %c0_i32_0 : i32, i32
  }
  func.func @transform_4(%arg0: i32) -> (i32, i32) {
    %c0_i32 = arith.constant 0 : i32
    %c0_i32_0 = arith.constant 0 : i32
    return %arg0, %c0_i32 : i32, i32
  }
}

</mosaic_0001>

<bundles_post_ra>
// kernel: match_lr_forward.1
= control target key start
LH: loop header
LB: loop body
LE: loop exit
PB: predicated region body
PF: predicated region fallthrough
CT: control target
= control target key end

     0   :  { %v437_v0 = vmov 0.0|0.0   ;;  %vm38_vm0 = vcmask 1040384   ;;  %vm438_vm1 = vmmov 0   ;;  %v439_v6 = vmov 0.0   ;;  %s553_s2 = inlined_call_operand.vmem [shape: f32[2,25,25], index: 2, kind: input, shape index: {}]   ;;  %s554_s0 = inlined_call_operand.vmem [shape: f32[2,25], index: 0, kind: input, shape index: {}]   ;;  %s555_s3 = inlined_call_operand.vmem [shape: f32[6,25], index: 3, kind: input, shape index: {}]   ;;  %s556_s1 = inlined_call_operand.vmem [shape: f32[2,8,25], index: 1, kind: input, shape index: {}]   ;;  %s557_s4 = inlined_call_operand.vmem [shape: f32[2,1], index: 4, kind: output, shape index: {}]  }
   0x1   :  { %401 = vmatprep.subr.bf16.mxu0 %v437_v0  ;;  %v20_v1 = vld [vmem:[%s553_s2] sm:$0xff]  ;;  %v21_v2 = vld [vmem:[%s553_s2 + $0x8] sm:$0xff]  ;;  %v22_v3 = vld [vmem:[%s553_s2 + $0x10] sm:$0xff]  ;;  %408 = vmatprep.subr.bf16.mxu1 %v437_v0  ;;  %vm440_vm2 = vmmov 1   ;;  %vm34_vm4 = vcmask 203776   ;;  %v30_v10 = vlaneseq  ;;  %vm165_vm5 = vcmask 1041409  }
   0x2   :  { %v402_v4 = vpack.c.bf16 %v21_v2, %v20_v1  ;;  %v23_v5 = vld [vmem:[%s553_s2 + $0x18] sm:$0x1]  ;;  %387 = vmatprep.mubr.msk.f32.mxu0 %vm438_vm1, %v439_v6  ;;  %398 = vmatprep.mubr.msk.f32.mxu1 %vm438_vm1, %v439_v6  ;;  %vm483_vm3 = vmpackc.low %vm38_vm0, %vm440_vm2  ;;  %v492_v9 = vld [vmem:[%s554_s0] sm:$0x3]  ;;  %v441_v12 = vmov 1966171168  }
   0x3   :  { %v405_v7 = vpack.c.bf16 %v23_v5, %v22_v3  ;;  %v496_v11 = vshrl.u32 %v30_v10, 7  ;;  %v114_v13 = vunpack.c.l.s4 %v441_v12  ;;  %v502_v15 = vld [vmem:[%s555_s3] sm:$0x3f]  ;;  %v19_v28 = vld [vmem:[%s556_s1 + $0x8] sm:$0xff]  ;;  %v156_v34 = vand.u32 127, %v30_v10  ;;  %v362_v61 = vld [vmem:[%s553_s2 + $0x30] sm:$0xff] }
   0x4   :  { %403 = vmatpush3.bf16.msra.mxu0 %v402_v4  ;;  %v18_v25 = vld [vmem:[%s556_s1] sm:$0xff]  ;;  %vm168_vm6 = vcmask 58368   ;;  %v442_v42 = vmov 0   ;;  %v361_v60 = vld [vmem:[%s553_s2 + $0x28] sm:$0xff]  ;;  %v363_v63 = vld [vmem:[%s553_s2 + $0x38] sm:$0x1] }
   0x5   :  { %404 = vmatprep.subr.bf16.mxu0 %v437_v0  ;;  %v32_v14 = vsub.s32 0, %v496_v11  ;;  %v115_v16 = vunpack.c.0.s8 %v114_v13  ;;  %v159_v36 = vsub.s32 %v156_v34, %v496_v11  ;;  %422 = vset.pattern.permute.xlu0 %v442_v42  ;;  %v179_v43 = vsub.s32 1, %v496_v11  ;;  %v360_v59 = vld [vmem:[%s553_s2 + $0x20] sm:$0xff] }
   0x6   :  { %421 = vset.pattern.permute.xlu1 %v442_v42  ;;  %v409_v62 = vpack.c.bf16 %v361_v60, %v360_v59  ;;  %v412_v1 = vpack.c.bf16 %v363_v63, %v362_v61  ;;  %vm338_vm7 = vcmask 197632   ;;  %vm354_vm8 = vcmask 1024  }
   0x7   :  { %v33_v17 = vrot.slane %v502_v15, %v32_v14  ;;  %v118_v18 = vsub.s32 %v115_v16, %v496_v11 }
   0x8   :  { %407 = vmatpush3.bf16.msk.msra.mxu0 %vm483_vm3, %v405_v7  ;;  %410 = vmatpush3.bf16.msra.mxu1 %v409_v62 }
   0x9   :  { %411 = vmatprep.subr.bf16.mxu1 %v437_v0 }
   0xb   :  { %388 = vmatmul.mubr.msk.f32.vlgmr.msra.gmra.mrb[0].mxu0 %vm34_vm4, %v492_v9 }
   0xc   :  { %414 = vmatpush3.bf16.msk.msra.mxu1 %vm483_vm3, %v412_v1 }
  0xde   :  { %v108_v19 = vpop.f32.mrb[0].mxu0 }
  0xdf   :  { %v109_v20 = vadd.f32 %v108_v19, %v33_v17  ;;  %v389_v21 = vpop.f32.mrb[1].mxu0 }
  0xe1   :  { %v119_v22 = vrot.slane %v109_v20, %v118_v18 }
  0xe3   :  { %v120_v23 = vcombine.high %v119_v22, %v119_v22  ;;  %v127_v24 = vrot.slane %v119_v22, %v118_v18 }
  0xe5   :  { %v138_v26 = vrot.slane %v127_v24, %v32_v14  ;;  %v134_v27 = vrot.slane %v120_v23, %v118_v18 }
  0xe7   :  { %v145_v29 = vmul.f32 %v138_v26, %v18_v25  ;;  %v142_v30 = vrot.slane %v134_v27, %v32_v14  ;;  %v238_v27 = vrot.slane %v502_v15, %v179_v43 }
  0xe9   :  { %v147_v31 = vsel %vm34_vm4, %v145_v29, 0.0  ;;  %v146_v32 = vmul.f32 %v142_v30, %v19_v28  ;;  %v328_v29 = vsub.s32 3, %v496_v11 }
  0xea   :  { %148 = vadd.xlane.f32.xlu0 %v147_v31 }
  0xeb   :  { %v150_v33 = vsel %vm34_vm4, %v146_v32, 0.0 }
  0xee   :  { %151 = vadd.xlane.f32.xlu0 %v150_v33  ;;  %v329_v33 = vrot.slane %v502_v15, %v328_v29 }
 0x177   :  { %v149_v35 = vpop.xlane.xlu0 %148 }
 0x178   :  { %v160_v38 = vrot.slane %v149_v35, %v159_v36 }
 0x17b   :  { %v152_v37 = vpop.xlane.xlu0 %151 }
 0x17c   :  { %v164_v39 = vrot.slane %v152_v37, %v159_v36 }
 0x17e   :  { %v166_v40 = vsel %vm165_vm5, %v164_v39, %v160_v38  ;;  %v335_v39 = vsub.s32 4, %v496_v11 }
 0x17f   :  { %v169_v41 = vsel %vm168_vm6, %v166_v40, -inf }
 0x180   :  { %170 = vmax.xlane.f32.xlu1 %v169_v41  ;;  %v336_v41 = vrot.slane %v502_v15, %v335_v39 }
 0x20d   :  { %v171_v44 = vpop.xlane.xlu1 %170 }
 0x20e   :  { %v176_v45 = vrot.slane %v171_v44, %v32_v14  ;;  %v180_v46 = vrot.slane %v171_v44, %v179_v43 }
 0x210   :  { %v183_v47 = vsub.f32 %v149_v35, %v176_v45  ;;  %v184_v48 = vsub.f32 %v152_v37, %v180_v46  ;;  %v344_v46 = vsub.s32 5, %v496_v11 }
 0x212   :  { %v185_v49 = vmul.f32 1.442695, %v183_v47  ;;  %v187_v50 = vmul.f32 1.442695, %v184_v48  ;;  %v345_v47 = vrot.slane %v502_v15, %v344_v46 }
 0x214   :  { %423 = vpow2.f32 %v185_v49 }
 0x215   :  { %425 = vpow2.f32 %v187_v50 }
 0x21e   :  { %v424_v51 = vpop.eup %423 }
 0x21f   :  { %v426_v52 = vpop.eup %425  ;;  %192 = vperm.xlu1 %421, %v424_v51  }
 0x220   :  { %195 = vperm.xlu0 %422, %v426_v52  }
 0x29e   :  { %v193_v53 = vpop.permute.xlu1 %192 }
 0x29f   :  { %v196_v54 = vpop.permute.xlu0 %195  ;;  %v200_v55 = vrot.slane %v193_v53, %v159_v36  ;;  %v212_v3 = vmul.f32 %v193_v53, %v18_v25 }
 0x2a0   :  { %v204_v56 = vrot.slane %v196_v54, %v159_v36  ;;  %v213_v2 = vmul.f32 %v196_v54, %v19_v28  ;;  %v321_v28 = vsub.s32 2, %v496_v11 }
 0x2a1   :  { %v214_v5 = vsel %vm34_vm4, %v212_v3, 0.0 }
 0x2a2   :  { %v205_v57 = vsel %vm165_vm5, %v204_v56, %v200_v55  ;;  %v221_v4 = vsel %vm34_vm4, %v213_v2, 0.0  ;;  %v215_v7 = vrot.slane %v214_v5, 4  ;;  %v322_v32 = vrot.slane %v502_v15, %v321_v28 }
 0x2a3   :  { %v207_v58 = vsel %vm168_vm6, %v205_v57, 0.0  ;;  %v222_v6 = vrot.slane %v221_v4, 4 }
 0x2a4   :  { %208 = vadd.xlane.f32.xlu1 %v207_v58  ;;  %v216_v12 = vadd.f32 %v215_v7, %v214_v5 }
 0x2a5   :  { %v223_v10 = vadd.f32 %v222_v6, %v221_v4 }
 0x2a6   :  { %v217_v16 = vrot.slane %v216_v12, 2 }
 0x2a7   :  { %v224_v13 = vrot.slane %v223_v10, 2 }
 0x2a8   :  { %v218_v18 = vadd.f32 %v217_v16, %v216_v12 }
 0x2a9   :  { %v225_v17 = vadd.f32 %v224_v13, %v223_v10 }
 0x2aa   :  { %v219_v19 = vrot.slane %v218_v18, 1 }
 0x2ab   :  { %v226_v0 = vrot.slane %v225_v17, 1 }
 0x2ac   :  { %v220_v22 = vadd.f32 %v219_v19, %v218_v18 }
 0x2ad   :  { %v227_v20 = vadd.f32 %v226_v0, %v225_v17 }
 0x331   :  { %v209_v14 = vpop.xlane.xlu1 %208 }
 0x332   :  { %427 = vrcp.f32 %v209_v14 }
 0x33c   :  { %v428_v8 = vpop.eup %427 }
 0x33d   :  { %v230_v21 = vrot.slane %v428_v8, 1  ;;  %v233_v24 = vmul.f32 %v428_v8, %v220_v22 }
 0x33f   :  { %v234_v23 = vmul.f32 %v230_v21, %v227_v20 }
 0x341   :  { %v241_v25 = vrot.slane %v234_v23, 7 }
 0x343   :  { %v242_v26 = vsel %vm165_vm5, %v241_v25, %v233_v24 }
 0x344   :  { %399 = vmatmul.mubr.msk.f32.vlgmr.msra.gmra.mrb[0].mxu1 %vm34_vm4, %v242_v26 }
 0x417   :  { %v314_v30 = vpop.f32.mrb[0].mxu1 }
 0x418   :  { %v315_v31 = vadd.f32 %v314_v30, %v238_v27  ;;  %v400_v34 = vpop.f32.mrb[1].mxu1 }
 0x41a   :  { %v318_v35 = vadd.f32 %v315_v31, %v492_v9  ;;  %v325_v36 = vsub.f32 %v492_v9, %v315_v31 }
 0x41c   :  { %v323_v37 = vmul.f32 %v322_v32, %v318_v35  ;;  %v330_v38 = vmul.f32 %v329_v33, %v325_v36 }
 0x41e   :  { %429 = vtanh.f32 %v323_v37 }
 0x41f   :  { %431 = vtanh.f32 %v330_v38 }
 0x428   :  { %v430_v40 = vpop.eup %429 }
 0x429   :  { %v432_v42 = vpop.eup %431 }
 0x42a   :  { %v332_v43 = vadd.f32 %v432_v42, %v430_v40 }
 0x42c   :  { %v337_v44 = vmul.f32 %v336_v41, %v332_v43 }
 0x42e   :  { %v339_v45 = vsel %vm338_vm7, %v337_v44, 0.0 }
 0x42f   :  { %340 = vadd.xlane.f32.xlu0 %v339_v45 }
 0x4bc   :  { %v341_v9 = vpop.xlane.xlu0 %340 }
 0x4bd   :  { %v346_v48 = vadd.f32 %v345_v47, %v341_v9 }
 0x4bf   :  { %v368_v49 = vmul.f32 -1.442695, %v346_v48 }
 0x4c1   :  { %433 = vpow2.f32 %v368_v49 }
 0x4cb   :  { %v434_v50 = vpop.eup %433 }
 0x4cc   :  { %v350_v51 = vadd.f32 1.0, %v434_v50 }
 0x4ce   :  { %435 = vrcp.f32 %v350_v51 }
 0x4d8   :  { %v436_v52 = vpop.eup %435 }
 0x4d9   :  { %v353_v53 = vmul.f32 3.0, %v436_v52 }
 0x4db   :  { %355 = vst.msk [vmem:[%s557_s4] sm:$0x3] %vm354_vm8, %v353_v53 }

</bundles_post_ra>
